<compile_context>
chip_gen: v6e
topology: v6e:2x2x1
jax: 0.10.0
libtpu: 0.0.40
codegen_flags: <defaults>
</compile_context>

<pallas_src>
import functools

import jax
import jax.numpy as jnp
from jax.experimental import pallas as pl
from jax.experimental.pallas import tpu as pltpu

LANE = 128


def _round_up(x, m):
    return (x + m - 1) // m * m


def _cdiv(a, b):
    return -(-a // b)


def _pad8(x):
    return _round_up(max(int(x), 1), 8)


def _make_decoder_kernel(num_layers):
    """Fused MLP (folded first layer) + sigmoid + L2 normalize, feature-major.

    Ref layout (batch on the 128-lane axis, features on sublanes):
      z_ref     : (latent, TB)  f32  batch-tiled
      extra_ref : (h0, TB)      f32  batch-tiled (= b0 + gathered one-hot rows)
      w0t_ref   : (h0, latent)  f32  VMEM-resident (transposed first weight)
      [wt_i, b_i] for i=1..L-1  f32  resident; wt (out_i, in_i), b (out_i, 1)
      out_ref   : (out, TB)     f32  batch-tiled (lane-dense store)
    """

    def kernel(z_ref, extra_ref, w0t_ref, *rest):
        out_ref = rest[-1]
        wb = rest[:-1]

        def activate(h, is_last):
            return jax.nn.sigmoid(h) if is_last else jnp.maximum(h, 0.0)

        # Layer 0: one-hot/concat already folded into `extra`.
        h = jnp.dot(w0t_ref[...], z_ref[...],
                    preferred_element_type=jnp.float32)
        h = h + extra_ref[...]
        h = activate(h, num_layers == 1)

        for i in range(1, num_layers):
            wt = wb[2 * (i - 1)][...]            # (out_i, in_i)
            b = wb[2 * (i - 1) + 1][...]         # (out_i, 1) broadcasts on lanes
            h = jnp.dot(wt, h, preferred_element_type=jnp.float32) + b
            h = activate(h, i == num_layers - 1)

        # F.normalize(x, p=2, dim=1) == x / max(||x||_2, 1e-12).
        # Feature axis is axis 0 in this layout.
        sq = jnp.sum(h * h, axis=0, keepdims=True)
        h = h / jnp.maximum(jnp.sqrt(sq), 1e-12)
        out_ref[...] = h.astype(out_ref.dtype)

    return kernel


def decoder_forward(z, c, d, params, *, num_labels, num_domains, conditional,
                    max_batch_tile=4096):
    """One-hot fold (wrapper gather) + feature-major batch-tiled Pallas MLP."""
    z = z.astype(jnp.float32)
    B, latent = z.shape
    num_layers = len(params)
    w0, b0 = params[0]
    w0 = w0.astype(jnp.float32)
    h0 = w0.shape[1]
    out_dim = params[-1][0].shape[1]

    # --- fold one-hot(c)/one-hot(d) + concat into the first linear ----------
    extra = jnp.broadcast_to(b0.astype(jnp.float32)[None, :], (B, h0))
    off = latent
    if conditional:
        extra = extra + jnp.take(w0[off:off + num_labels], c.reshape(-1), axis=0)
        off += num_labels
    if num_domains > 0:
        extra = extra + jnp.take(w0[off:off + num_domains], d.reshape(-1), axis=0)

    # --- feature-major (lane-dense) operands ---------------------------------
    z_t = z.T                                        # (latent, B)
    extra_t = extra.T                                # (h0, B)
    w0t = w0[:latent].T                              # (h0, latent)
    wts = [(w.astype(jnp.float32).T,                 # (out_i, in_i)
            b.astype(jnp.float32).reshape(-1, 1))    # (out_i, 1)
           for (w, b) in params[1:]]

    # --- VMEM footprint (sublane/lane-padded) and generation-aware budget ----
    widths = [latent, h0] + [wt.shape[0] for (wt, _) in wts]
    resident_bytes = 2 * _pad8(h0) * _round_up(latent, LANE) * 4
    for (wt, bt) in wts:
        resident_bytes += 2 * _pad8(wt.shape[0]) * _round_up(wt.shape[1], LANE) * 4
        resident_bytes += 2 * _pad8(bt.shape[0]) * LANE * 4

    def footprint(tb):
        streamed = 2 * tb * 4 * (_pad8(latent) + _pad8(h0) + _pad8(out_dim))
        live = 4 * tb * 4 * _pad8(max(widths))
        return resident_bytes + streamed + live

    try:
        vmem_cap = int(getattr(pltpu.get_tpu_info(), "vmem_capacity_bytes",
                               64 << 20))
    except Exception:
        vmem_cap = 64 << 20                          # conservative (v7x per-TC)
    vmem_budget = (vmem_cap * 3) // 4                # headroom for runtime use

    # --- balanced batch-tile selection (batch = lane axis, multiple of 128) --
    n128 = max(1, _cdiv(B, LANE))
    max_tiles = max(1, int(max_batch_tile) // LANE)
    n_steps = _cdiv(n128, max_tiles)
    if n128 >= 2:
        n_steps = max(n_steps, 2)        # v7x: >=2 grid steps -> both TCs work
    tiles_per_step = _cdiv(n128, n_steps)
    while tiles_per_step > 1 and footprint(tiles_per_step * LANE) > vmem_budget:
        tiles_per_step -= 1
    tb = tiles_per_step * LANE

    B_pad = _round_up(B, tb)
    if B_pad != B:
        z_t = jnp.pad(z_t, ((0, 0), (0, B_pad - B)))
        extra_t = jnp.pad(extra_t, ((0, 0), (0, B_pad - B)))
    grid = (B_pad // tb,)

    vmem_limit = int(min(vmem_budget, max(2 * footprint(tb), 16 << 20)))

    # --- specs: activations batch-tiled (lane axis), weights resident --------
    def batched(rows):
        return pl.BlockSpec((rows, tb), lambda i: (0, i))

    def resident(shape):
        return pl.BlockSpec(shape, lambda i: (0, 0))

    flat_args = [z_t, extra_t, w0t]
    in_specs = [batched(latent), batched(h0), resident(w0t.shape)]
    for (wt, bt) in wts:
        flat_args += [wt, bt]
        in_specs += [resident(wt.shape), resident(bt.shape)]

    kernel = _make_decoder_kernel(num_layers)
    out = pl.pallas_call(
        kernel,
        out_shape=jax.ShapeDtypeStruct((out_dim, B_pad), jnp.float32),
        grid_spec=pltpu.PrefetchScalarGridSpec(
            num_scalar_prefetch=0,
            grid=grid,
            in_specs=in_specs,
            out_specs=batched(out_dim),
        ),
        compiler_params=pltpu.CompilerParams(
            dimension_semantics=("parallel",),   # v7x: shard batch over both TCs
            vmem_limit_bytes=vmem_limit,
        ),
    )(*flat_args)

    return out[:, :B].T                               # back to (B, out_dim)


def decoder_reference(z, c, d, params, *, num_labels, num_domains, conditional):
    """Pure-JAX reference (mirrors the PyTorch Decoder.forward exactly)."""
    x = z.astype(jnp.float32)
    if conditional:
        x = jnp.concatenate(
            [x, jax.nn.one_hot(c.reshape(-1), num_labels, dtype=x.dtype)], -1)
    if num_domains > 0:
        x = jnp.concatenate(
            [x, jax.nn.one_hot(d.reshape(-1), num_domains, dtype=x.dtype)], -1)
    for i, (w, b) in enumerate(params):
        x = x @ w.astype(jnp.float32) + b.astype(jnp.float32)
        x = jax.nn.sigmoid(x) if i == len(params) - 1 else jnp.maximum(x, 0.0)
    n = jnp.sqrt(jnp.sum(x * x, axis=1, keepdims=True))
    return x / jnp.maximum(n, 1e-12)


def init_decoder_params(key, layer_sizes, latent_size, conditional, num_labels,
                        num_domains):
    """PyTorch nn.Linear default init: U(-1/sqrt(in), 1/sqrt(in)); W stored (in, out)."""
    input_size = latent_size + (num_labels if conditional else 0)
    if num_domains > 0:
        input_size += num_domains

    params = []
    in_sizes = [input_size] + list(layer_sizes[:-1])
    for in_size, out_size in zip(in_sizes, layer_sizes):
        key, kw, kb = jax.random.split(key, 3)
        bound = 1.0 / jnp.sqrt(jnp.float32(in_size))
        w = jax.random.uniform(kw, (in_size, out_size), jnp.float32, -bound, bound)
        b = jax.random.uniform(kb, (out_size,), jnp.float32, -bound, bound)
        params.append((w, b))
    return params


if __name__ == "__main__":
    # Small, forward-consistent shapes.
    layer_sizes = [32, 64, 16]
    latent_size = 8
    conditional = True
    num_labels = 4
    num_domains = 3

    key = jax.random.PRNGKey(0)
    kz, kc, kd, kp = jax.random.split(key, 4)
    params = init_decoder_params(kp, layer_sizes, latent_size, conditional,
                                 num_labels, num_domains)

    fwd = jax.jit(functools.partial(decoder_forward,
                                    num_labels=num_labels,
                                    num_domains=num_domains,
                                    conditional=conditional))

    # Case 1: tiny batch (B=2) — padded to one 128-lane tile.
    B = 2
    z = jax.random.normal(kz, (B, latent_size), dtype=jnp.float32)
    c = jax.random.randint(kc, (B,), 0, num_labels, dtype=jnp.int32)
    d = jax.random.randint(kd, (B,), 0, num_domains, dtype=jnp.int32)
    out = fwd(z, c, d, params)
    jax.block_until_ready(out)

    ref = decoder_reference(z, c, d, params, num_labels=num_labels,
                            num_domains=num_domains, conditional=conditional)
    assert out.shape == (B, layer_sizes[-1])
    assert bool(jnp.all(jnp.isfinite(out)))
    norms = jnp.sqrt(jnp.sum(out * out, axis=1))
    assert bool(jnp.all(jnp.abs(norms - 1.0) < 1e-3))
    assert bool(jnp.max(jnp.abs(out - ref)) < 2e-3)

    # Case 2: multi-step batch grid (>=2 steps) and tile-size invariance.
    B2 = 300
    kz2, kc2, kd2 = jax.random.split(jax.random.PRNGKey(1), 3)
    z2 = jax.random.normal(kz2, (B2, latent_size), dtype=jnp.float32)
    c2 = jax.random.randint(kc2, (B2,), 0, num_labels, dtype=jnp.int32)
    d2 = jax.random.randint(kd2, (B2,), 0, num_domains, dtype=jnp.int32)

    out_big_tile = decoder_forward(z2, c2, d2, params,
                                   num_labels=num_labels,
                                   num_domains=num_domains,
                                   conditional=conditional)          # grid = 2
    out_small_tile = decoder_forward(z2, c2, d2, params,
                                     num_labels=num_labels,
                                     num_domains=num_domains,
                                     conditional=conditional,
                                     max_batch_tile=128)             # grid = 3
    jax.block_until_ready((out_big_tile, out_small_tile))

    ref2 = decoder_reference(z2, c2, d2, params, num_labels=num_labels,
                             num_domains=num_domains, conditional=conditional)
    assert out_big_tile.shape == (B2, layer_sizes[-1])
    norms2 = jnp.sqrt(jnp.sum(out_small_tile * out_small_tile, axis=1))
    assert bool(jnp.all(jnp.abs(norms2 - 1.0) < 1e-3))
    assert bool(jnp.max(jnp.abs(out_big_tile - out_small_tile)) < 1e-5)
    assert bool(jnp.max(jnp.abs(out_big_tile - ref2)) < 2e-3)

    print("KERNEL_OK")
</pallas_src>

<mosaic_0001>
module attributes {stable_mosaic.version = 11 : i64} {
  func.func @kernel(%arg0: i32, %arg1: memref<8x128xf32, #tpu.memory_space<vmem>>, %arg2: memref<32x128xf32, #tpu.memory_space<vmem>>, %arg3: memref<32x8xf32, #tpu.memory_space<vmem>>, %arg4: memref<64x32xf32, #tpu.memory_space<vmem>>, %arg5: memref<64x1xf32, #tpu.memory_space<vmem>>, %arg6: memref<16x64xf32, #tpu.memory_space<vmem>>, %arg7: memref<16x1xf32, #tpu.memory_space<vmem>>, %arg8: memref<16x128xf32, #tpu.memory_space<vmem>>) attributes {dimension_semantics = [#tpu.dimension_semantics<parallel>], iteration_bounds = array<i64: 1>, scalar_prefetch = 0 : i64, scratch_operands = 0 : i64, tpu.core_type = #tpu.core_type<tc>, window_params = [{transform_indices = @transform_0, window_bounds = array<i64: 8, 128>}, {transform_indices = @transform_1, window_bounds = array<i64: 32, 128>}, {pipeline_mode = #tpu.pipeline_mode<synchronous>, transform_indices = @transform_2, window_bounds = array<i64: 32, 8>}, {pipeline_mode = #tpu.pipeline_mode<synchronous>, transform_indices = @transform_3, window_bounds = array<i64: 64, 32>}, {pipeline_mode = #tpu.pipeline_mode<synchronous>, transform_indices = @transform_4, window_bounds = array<i64: 64, 1>}, {pipeline_mode = #tpu.pipeline_mode<synchronous>, transform_indices = @transform_5, window_bounds = array<i64: 16, 64>}, {pipeline_mode = #tpu.pipeline_mode<synchronous>, transform_indices = @transform_6, window_bounds = array<i64: 16, 1>}, {transform_indices = @transform_7, window_bounds = array<i64: 16, 128>}]} {
    %c0 = arith.constant 0 : index
    %c0_0 = arith.constant 0 : index
    %0 = vector.load %arg3[%c0, %c0_0] : memref<32x8xf32, #tpu.memory_space<vmem>>, vector<32x8xf32>
    %c0_1 = arith.constant 0 : index
    %c0_2 = arith.constant 0 : index
    %1 = vector.load %arg1[%c0_1, %c0_2] : memref<8x128xf32, #tpu.memory_space<vmem>>, vector<8x128xf32>
    %cst = arith.constant dense<0.000000e+00> : vector<32x128xf32>
    %2 = tpu.matmul %0, %1, %cst {dimension_numbers = #tpu.dot_dimension_numbers<[1], [0], [0], [1], [0, 0, 1, 1], [], []>} : vector<32x8xf32>, vector<8x128xf32>, vector<32x128xf32> -> vector<32x128xf32>
    %c0_3 = arith.constant 0 : index
    %c0_4 = arith.constant 0 : index
    %3 = vector.load %arg2[%c0_3, %c0_4] : memref<32x128xf32, #tpu.memory_space<vmem>>, vector<32x128xf32>
    %4 = arith.addf %2, %3 : vector<32x128xf32>
    %cst_5 = arith.constant 0.000000e+00 : f32
    %5 = vector.broadcast %cst_5 : f32 to vector<32x128xf32>
    %6 = arith.maximumf %4, %5 : vector<32x128xf32>
    %c0_6 = arith.constant 0 : index
    %c0_7 = arith.constant 0 : index
    %7 = vector.load %arg4[%c0_6, %c0_7] : memref<64x32xf32, #tpu.memory_space<vmem>>, vector<64x32xf32>
    %c0_8 = arith.constant 0 : index
    %c0_9 = arith.constant 0 : index
    %8 = vector.load %arg5[%c0_8, %c0_9] : memref<64x1xf32, #tpu.memory_space<vmem>>, vector<64x1xf32>
    %cst_10 = arith.constant dense<0.000000e+00> : vector<64x128xf32>
    %9 = tpu.matmul %7, %6, %cst_10 {dimension_numbers = #tpu.dot_dimension_numbers<[1], [0], [0], [1], [0, 0, 1, 1], [], []>} : vector<64x32xf32>, vector<32x128xf32>, vector<64x128xf32> -> vector<64x128xf32>
    %10 = vector.broadcast %8 : vector<64x1xf32> to vector<64x128xf32>
    %11 = arith.addf %9, %10 : vector<64x128xf32>
    %cst_11 = arith.constant 0.000000e+00 : f32
    %12 = vector.broadcast %cst_11 : f32 to vector<64x128xf32>
    %13 = arith.maximumf %11, %12 : vector<64x128xf32>
    %c0_12 = arith.constant 0 : index
    %c0_13 = arith.constant 0 : index
    %14 = vector.load %arg6[%c0_12, %c0_13] : memref<16x64xf32, #tpu.memory_space<vmem>>, vector<16x64xf32>
    %c0_14 = arith.constant 0 : index
    %c0_15 = arith.constant 0 : index
    %15 = vector.load %arg7[%c0_14, %c0_15] : memref<16x1xf32, #tpu.memory_space<vmem>>, vector<16x1xf32>
    %cst_16 = arith.constant dense<0.000000e+00> : vector<16x128xf32>
    %16 = tpu.matmul %14, %13, %cst_16 {dimension_numbers = #tpu.dot_dimension_numbers<[1], [0], [0], [1], [0, 0, 1, 1], [], []>} : vector<16x64xf32>, vector<64x128xf32>, vector<16x128xf32> -> vector<16x128xf32>
    %17 = vector.broadcast %15 : vector<16x1xf32> to vector<16x128xf32>
    %18 = arith.addf %16, %17 : vector<16x128xf32>
    %19 = arith.negf %18 : vector<16x128xf32>
    %20 = math.exp %19 : vector<16x128xf32>
    %cst_17 = arith.constant 1.000000e+00 : f32
    %21 = vector.broadcast %cst_17 : f32 to vector<16x128xf32>
    %22 = arith.addf %21, %20 : vector<16x128xf32>
    %23 = arith.divf %21, %22 : vector<16x128xf32>
    %24 = arith.mulf %23, %23 : vector<16x128xf32>
    %cst_18 = arith.constant dense<0.000000e+00> : vector<128xf32>
    %25 = vector.multi_reduction <add>, %24, %cst_18 [0] : vector<16x128xf32> to vector<128xf32>
    %26 = vector.shape_cast %25 : vector<128xf32> to vector<1x128xf32>
    %27 = math.sqrt %26 : vector<1x128xf32>
    %cst_19 = arith.constant 9.99999996E-13 : f32
    %28 = vector.broadcast %cst_19 : f32 to vector<1x128xf32>
    %29 = arith.maximumf %27, %28 : vector<1x128xf32>
    %30 = vector.broadcast %29 : vector<1x128xf32> to vector<16x128xf32>
    %31 = arith.divf %23, %30 : vector<16x128xf32>
    %c0_20 = arith.constant 0 : index
    %c0_21 = arith.constant 0 : index
    %32 = vector.load %arg8[%c0_20, %c0_21] : memref<16x128xf32, #tpu.memory_space<vmem>>, vector<16x128xf32>
    tpu.vector_store %arg8[%c0_20, %c0_21], %31 {strides = array<i32>} : memref<16x128xf32, #tpu.memory_space<vmem>>, vector<16x128xf32>,
    return
  }
  func.func @transform_0(%arg0: i32) -> (i32, i32) {
    %c0_i32 = arith.constant 0 : i32
    %c0_i32_0 = arith.constant 0 : i32
    return %c0_i32, %arg0 : i32, i32
  }
  func.func @transform_1(%arg0: i32) -> (i32, i32) {
    %c0_i32 = arith.constant 0 : i32
    %c0_i32_0 = arith.constant 0 : i32
    return %c0_i32, %arg0 : i32, i32
  }
  func.func @transform_2(%arg0: i32) -> (i32, i32) {
    %c0_i32 = arith.constant 0 : i32
    %c0_i32_0 = arith.constant 0 : i32
    %c0_i32_1 = arith.constant 0 : i32
    return %c0_i32, %c0_i32_0 : i32, i32
  }
  func.func @transform_3(%arg0: i32) -> (i32, i32) {
    %c0_i32 = arith.constant 0 : i32
    %c0_i32_0 = arith.constant 0 : i32
    %c0_i32_1 = arith.constant 0 : i32
    return %c0_i32, %c0_i32_0 : i32, i32
  }
  func.func @transform_4(%arg0: i32) -> (i32, i32) {
    %c0_i32 = arith.constant 0 : i32
    %c0_i32_0 = arith.constant 0 : i32
    %c0_i32_1 = arith.constant 0 : i32
    return %c0_i32, %c0_i32_0 : i32, i32
  }
  func.func @transform_5(%arg0: i32) -> (i32, i32) {
    %c0_i32 = arith.constant 0 : i32
    %c0_i32_0 = arith.constant 0 : i32
    %c0_i32_1 = arith.constant 0 : i32
    return %c0_i32, %c0_i32_0 : i32, i32
  }
  func.func @transform_6(%arg0: i32) -> (i32, i32) {
    %c0_i32 = arith.constant 0 : i32
    %c0_i32_0 = arith.constant 0 : i32
    %c0_i32_1 = arith.constant 0 : i32
    return %c0_i32, %c0_i32_0 : i32, i32
  }
  func.func @transform_7(%arg0: i32) -> (i32, i32) {
    %c0_i32 = arith.constant 0 : i32
    %c0_i32_0 = arith.constant 0 : i32
    return %c0_i32, %arg0 : i32, i32
  }
}

</mosaic_0001>

<bundles_post_ra>
// kernel: decoder_forward.1
= control target key start
LH: loop header
LB: loop body
LE: loop exit
PB: predicated region body
PF: predicated region fallthrough
CT: control target
= control target key end

     0   :  { %vm35_vm0 = vcmask 64512   ;;  %vm193_vm1 = vcmask 261120   ;;  %v570_v6 = vmov 0   ;;  %vm345_vm2 = vcmask 523264   ;;  %s714_s0 = inlined_call_operand.vmem [shape: f32[8,128], index: 0, kind: input, shape index: {}]   ;;  %s715_s2 = inlined_call_operand.vmem [shape: f32[32,8], index: 2, kind: input, shape index: {}]   ;;  %s716_s3 = inlined_call_operand.vmem [shape: f32[64,32], index: 3, kind: input, shape index: {}]   ;;  %s717_s4 = inlined_call_operand.vmem [shape: f32[64,1], index: 4, kind: input, shape index: {}]   ;;  %s718_s6 = inlined_call_operand.vmem [shape: f32[16,1], index: 6, kind: input, shape index: {}]   ;;  %s719_s1 = inlined_call_operand.vmem [shape: f32[32,128], index: 1, kind: input, shape index: {}]   ;;  %s720_s5 = inlined_call_operand.vmem [shape: f32[16,64], index: 5, kind: input, shape index: {}]   ;;  %s721_s7 = inlined_call_operand.vmem [shape: f32[16,128], index: 7, kind: output, shape index: {}]  }
   0x1   :  { %v30_v0 = vld [vmem:[%s714_s0] sm:$0xff]  ;;  %v27_v2 = vld [vmem:[%s715_s2 + $0x8] sm:$0xff]  ;;  %v28_v3 = vld [vmem:[%s715_s2 + $0x10] sm:$0xff]  ;;  %556 = vset.pattern.permute.xlu0 %v570_v6  ;;  %557 = vset.pattern.permute.xlu1 %v570_v6 }
   0x2   :  { %v26_v1 = vld [vmem:[%s715_s2] sm:$0xff]  ;;  %508 = vmatprep.subr.mxu0 %v30_v0  ;;  %v29_v4 = vld [vmem:[%s715_s2 + $0x18] sm:$0xff]  ;;  %v150_v8 = vld [vmem:[%s717_s4 + $0x28] sm:$0xff] }
   0x3   :  { %510 = vmatprep.mubr.msk.f32.mxu0 %vm35_vm0, %v26_v1  ;;  %509 = vmatpush3.msra.mxu0 %v30_v0  ;;  %v137_v5 = vld [vmem:[%s716_s3] sm:$0xff]  ;;  %v152_v7 = vld [vmem:[%s717_s4 + $0x38] sm:$0xff]  ;;  %v151_v9 = vld [vmem:[%s717_s4 + $0x30] sm:$0xff] }
   0x4   :  { %511 = vmatmul.mubr.msk.f32.vlgmr.msra.gmra.mxu0 %vm35_vm0, %v27_v2  ;;  %524 = vmatprep.mubr.msk.f32.mxu1 %vm193_vm1, %v137_v5  ;;  %v149_v10 = vld [vmem:[%s717_s4 + $0x20] sm:$0xff]  ;;  %v148_v11 = vld [vmem:[%s717_s4 + $0x18] sm:$0xff]  ;;  %v147_v12 = vld [vmem:[%s717_s4 + $0x10] sm:$0xff] }
   0x5   :  { %513 = vmatprep.mubr.msk.f32.mxu0 %vm35_vm0, %v28_v3  ;;  %190 = vperm.xlu0 %556, %v152_v7   ;;  %v146_v13 = vld [vmem:[%s717_s4 + $0x8] sm:$0xff]  ;;  %v145_v14 = vld [vmem:[%s717_s4] sm:$0xff]  ;;  %v34_v19 = vld [vmem:[%s719_s1 + $0x18] sm:$0xff] }
   0x6   :  { %180 = vperm.xlu1 %557, %v150_v8   ;;  %v333_v15 = vld [vmem:[%s718_s6] sm:$0xff]  ;;  %v334_v16 = vld [vmem:[%s718_s6 + $0x8] sm:$0xff]  ;;  %v33_v22 = vld [vmem:[%s719_s1 + $0x10] sm:$0xff] }
   0x7   :  { %v32_v20 = vld [vmem:[%s719_s1 + $0x8] sm:$0xff]  ;;  %v31_v24 = vld [vmem:[%s719_s1] sm:$0xff]  ;;  %v139_v34 = vld [vmem:[%s716_s3 + $0x10] sm:$0xff] }
   0x8   :  { %514 = vmatmul.mubr.msk.f32.gmra.mxu0 %vm35_vm0, %v29_v4  ;;  %v138_v33 = vld [vmem:[%s716_s3 + $0x8] sm:$0xff]  ;;  %v140_v35 = vld [vmem:[%s716_s3 + $0x18] sm:$0xff]  ;;  %v141_v36 = vld [vmem:[%s716_s3 + $0x20] sm:$0xff] }
   0x9   :  { %185 = vperm.xlu0 %556, %v151_v9   ;;  %v142_v37 = vld [vmem:[%s716_s3 + $0x28] sm:$0xff]  ;;  %v143_v38 = vld [vmem:[%s716_s3 + $0x30] sm:$0xff]  ;;  %v144_v39 = vld [vmem:[%s716_s3 + $0x38] sm:$0xff] }
   0xa   :  { %175 = vperm.xlu1 %557, %v149_v10   ;;  %v331_v40 = vld [vmem:[%s720_s5] sm:$0xff]  ;;  %v332_v9 = vld [vmem:[%s720_s5 + $0x8] sm:$0xff] }
   0xb   :  { %552 = vmatprep.mubr.msk.f32.mxu0 %vm345_vm2, %v331_v40 }
   0xd   :  { %170 = vperm.xlu0 %556, %v148_v11  }
   0xe   :  { %165 = vperm.xlu1 %557, %v147_v12  }
  0x11   :  { %160 = vperm.xlu0 %556, %v146_v13  }
  0x12   :  { %155 = vperm.xlu1 %557, %v145_v14  }
  0x15   :  { %337 = vperm.xlu0 %556, %v333_v15  }
  0x16   :  { %342 = vperm.xlu1 %557, %v334_v16  }
  0x80   :  { %v191_v42 = vpop.permute.xlu0 %190 }
  0x81   :  { %v181_v44 = vpop.permute.xlu1 %180 }
  0x84   :  { %v186_v47 = vpop.permute.xlu0 %185 }
  0x85   :  { %v176_v49 = vpop.permute.xlu1 %175 }
  0x88   :  { %v171_v53 = vpop.permute.xlu0 %170 }
  0x89   :  { %v166_v58 = vpop.permute.xlu1 %165 }
  0x8c   :  { %v161_v63 = vpop.permute.xlu0 %160 }
  0x8d   :  { %v156_v2 = vpop.permute.xlu1 %155 }
  0x90   :  { %v338_v13 = vpop.permute.xlu0 %337 }
  0x91   :  { %v343_v10 = vpop.permute.xlu1 %342 }
  0xc4   :  { %v512_v17 = vpop.f32.mrf.mxu0 }
  0xc5   :  { %v120_v26 = vadd.f32 %v512_v17, %v32_v20 }
  0xc6   :  { %v114_v18 = vpop.f32.mrf.mxu0 }
  0xc7   :  { %v115_v29 = vadd.f32 %v114_v18, %v31_v24  ;;  %v134_v31 = vmax.f32 %v120_v26, 0.0 }
  0xc8   :  { %v515_v21 = vpop.f32.mrf.mxu0 }
  0xc9   :  { %v130_v23 = vadd.f32 %v515_v21, %v34_v19  ;;  %v133_v32 = vmax.f32 %v115_v29, 0.0 }
  0xca   :  { %v124_v25 = vpop.f32.mrf.mxu0 }
  0xcb   :  { %v136_v27 = vmax.f32 %v130_v23, 0.0  ;;  %v125_v28 = vadd.f32 %v124_v25, %v33_v22 }
  0xcd   :  { %v135_v30 = vmax.f32 %v125_v28, 0.0  ;;  %516 = vmatprep.subr.mxu1 %v136_v27 }
  0xce   :  { %517 = vmatpush3.msra.mxu1 %v136_v27 }
  0xcf   :  { %518 = vmatprep.subr.mxu1 %v135_v30 }
  0xd0   :  { %519 = vmatpush3.msra.mxu1 %v135_v30 }
  0xd1   :  { %520 = vmatprep.subr.mxu1 %v134_v31 }
  0xd2   :  { %521 = vmatpush3.msra.mxu1 %v134_v31 }
  0xd3   :  { %522 = vmatprep.subr.mxu1 %v133_v32 }
  0xd4   :  { %523 = vmatpush3.msra.mxu1 %v133_v32 }
  0xd5   :  { %525 = vmatmul.mubr.msk.f32.vlgmr.msra.gmra.mxu1 %vm193_vm1, %v138_v33 }
  0xd6   :  { %527 = vmatprep.mubr.msk.f32.mxu1 %vm193_vm1, %v139_v34 }
  0xd9   :  { %528 = vmatmul.mubr.msk.f32.gmra.mxu1 %vm193_vm1, %v140_v35 }
  0xda   :  { %530 = vmatprep.mubr.msk.f32.mxu1 %vm193_vm1, %v141_v36 }
  0xdd   :  { %531 = vmatmul.mubr.msk.f32.gmra.mxu1 %vm193_vm1, %v142_v37 }
  0xde   :  { %533 = vmatprep.mubr.msk.f32.mxu1 %vm193_vm1, %v143_v38 }
  0xe1   :  { %534 = vmatmul.mubr.msk.f32.gmra.mxu1 %vm193_vm1, %v144_v39 }
 0x195   :  { %v526_v41 = vpop.f32.mrf.mxu1 }
 0x196   :  { %v290_v3 = vadd.f32 %v526_v41, %v161_v63 }
 0x197   :  { %v284_v43 = vpop.f32.mrf.mxu1 }
 0x198   :  { %v285_v5 = vadd.f32 %v284_v43, %v156_v2  ;;  %v324_v7 = vmax.f32 %v290_v3, 0.0 }
 0x199   :  { %v529_v45 = vpop.f32.mrf.mxu1 }
 0x19a   :  { %v300_v61 = vadd.f32 %v529_v45, %v171_v53  ;;  %v323_v8 = vmax.f32 %v285_v5, 0.0 }
 0x19b   :  { %v294_v46 = vpop.f32.mrf.mxu1 }
 0x19c   :  { %v295_v0 = vadd.f32 %v294_v46, %v166_v58  ;;  %v326_v4 = vmax.f32 %v300_v61, 0.0 }
 0x19d   :  { %v532_v48 = vpop.f32.mrf.mxu1 }
 0x19e   :  { %v310_v55 = vadd.f32 %v532_v48, %v181_v44  ;;  %v325_v6 = vmax.f32 %v295_v0, 0.0 }
 0x19f   :  { %v304_v50 = vpop.f32.mrf.mxu1 }
 0x1a0   :  { %v305_v59 = vadd.f32 %v304_v50, %v176_v49  ;;  %v328_v62 = vmax.f32 %v310_v55, 0.0 }
 0x1a1   :  { %v535_v51 = vpop.f32.mrf.mxu1 }
 0x1a2   :  { %v320_v52 = vadd.f32 %v535_v51, %v191_v42  ;;  %v327_v1 = vmax.f32 %v305_v59, 0.0 }
 0x1a3   :  { %v314_v54 = vpop.f32.mrf.mxu1 }
 0x1a4   :  { %v330_v56 = vmax.f32 %v320_v52, 0.0  ;;  %v315_v57 = vadd.f32 %v314_v54, %v186_v47 }
 0x1a6   :  { %v329_v60 = vmax.f32 %v315_v57, 0.0  ;;  %536 = vmatprep.subr.mxu0 %v330_v56 }
 0x1a7   :  { %537 = vmatpush3.msra.mxu0 %v330_v56 }
 0x1a8   :  { %538 = vmatprep.subr.mxu0 %v329_v60 }
 0x1a9   :  { %539 = vmatpush3.msra.mxu0 %v329_v60 }
 0x1aa   :  { %540 = vmatprep.subr.mxu0 %v328_v62 }
 0x1ab   :  { %541 = vmatpush3.msra.mxu0 %v328_v62 }
 0x1ac   :  { %542 = vmatprep.subr.mxu0 %v327_v1 }
 0x1ad   :  { %543 = vmatpush3.msra.mxu0 %v327_v1 }
 0x1ae   :  { %544 = vmatprep.subr.mxu0 %v326_v4 }
 0x1af   :  { %545 = vmatpush3.msra.mxu0 %v326_v4 }
 0x1b0   :  { %546 = vmatprep.subr.mxu0 %v325_v6 }
 0x1b1   :  { %547 = vmatpush3.msra.mxu0 %v325_v6 }
 0x1b2   :  { %548 = vmatprep.subr.mxu0 %v324_v7 }
 0x1b3   :  { %549 = vmatpush3.msra.mxu0 %v324_v7 }
 0x1b4   :  { %550 = vmatprep.subr.mxu0 %v323_v8 }
 0x1b5   :  { %551 = vmatpush3.msra.mxu0 %v323_v8 }
 0x1b6   :  { %553 = vmatmul.mubr.msk.f32.vlgmr.msra.gmra.mxu0 %vm345_vm2, %v332_v9 }
 0x276   :  { %v554_v11 = vpop.f32.mrf.mxu0 }
 0x277   :  { %v424_v12 = vadd.f32 %v554_v11, %v343_v10 }
 0x278   :  { %v418_v14 = vpop.f32.mrf.mxu0 }
 0x279   :  { %v480_v15 = vmul.f32 -1.442695, %v424_v12  ;;  %v419_v16 = vadd.f32 %v418_v14, %v338_v13 }
 0x27b   :  { %558 = vpow2.f32 %v480_v15  ;;  %v479_v17 = vmul.f32 -1.442695, %v419_v16 }
 0x27d   :  { %560 = vpow2.f32 %v479_v17 }
 0x288   :  { %v559_v18 = vpop.eup %558 }
 0x289   :  { %v434_v19 = vadd.f32 1.0, %v559_v18 }
 0x28a   :  { %v561_v20 = vpop.eup %560 }
 0x28b   :  { %562 = vrcp.f32 %v434_v19  ;;  %v433_v21 = vadd.f32 1.0, %v561_v20 }
 0x28d   :  { %564 = vrcp.f32 %v433_v21 }
 0x298   :  { %v563_v22 = vpop.eup %562 }
 0x299   :  { %v440_v24 = vmul.f32 %v563_v22, %v563_v22 }
 0x29a   :  { %v565_v23 = vpop.eup %564 }
 0x29b   :  { %v439_v25 = vmul.f32 %v565_v23, %v565_v23 }
 0x29d   :  { %v441_v26 = vadd.f32 %v440_v24, %v439_v25 }
 0x29f   :  { %v442_v27 = vrot.slane %v441_v26, 4 }
 0x2a1   :  { %v443_v28 = vadd.f32 %v442_v27, %v441_v26 }
 0x2a3   :  { %v444_v29 = vrot.slane %v443_v28, 2 }
 0x2a5   :  { %v445_v30 = vadd.f32 %v444_v29, %v443_v28 }
 0x2a7   :  { %v446_v31 = vrot.slane %v445_v30, 1 }
 0x2a9   :  { %v447_v32 = vadd.f32 %v446_v31, %v445_v30 }
 0x2ab   :  { %566 = vrsqrt.f32 %v447_v32  ;;  %vm450_vm3 = vcmp.eq.f32.partialorder %v447_v32, inf  ;;  %v453_v35 = vand.u32 2147483648, %v447_v32  ;;  %vm452_vm4 = vcmp.eq.f32.partialorder %v447_v32, 0.0 }
 0x2b8   :  { %v567_v33 = vpop.eup %566 }
 0x2b9   :  { %v449_v34 = vmul.f32 %v567_v33, %v447_v32 }
 0x2bb   :  { %v451_v36 = vsel %vm450_vm3, %v447_v32, %v449_v34 }
 0x2bc   :  { %v454_v37 = vsel %vm452_vm4, %v453_v35, %v451_v36 }
 0x2bd   :  { %v455_v38 = vmax.f32 %v454_v37, 1e-12 }
 0x2bf   :  { %568 = vrcp.f32 %v455_v38 }
 0x2cc   :  { %v569_v39 = vpop.eup %568 }
 0x2cd   :  { %v457_v40 = vmul.f32 %v569_v39, %v565_v23  ;;  %v458_v41 = vmul.f32 %v569_v39, %v563_v22 }
 0x2cf   :  { %459 = vst [vmem:[%s721_s7] sm:$0xff] %v457_v40  ;;  %460 = vst [vmem:[%s721_s7 + $0x8] sm:$0xff] %v458_v41 }

</bundles_post_ra>
